<compile_context>
chip_gen: v7x
topology: tpu7x:2x2x1
jax: 0.10.0
libtpu: 0.0.40
codegen_flags: <defaults>
</compile_context>

<pallas_src>
import functools

import jax
import jax.numpy as jnp
from jax.experimental import pallas as pl
from jax.experimental.pallas import tpu as pltpu


def _round_up(x, m):
    return ((x + m - 1) // m) * m


def _cdiv(a, b):
    return -(-a // b)


# ----------------------------- Pallas kernel ------------------------------- #

def _proxattn_kernel(q_ref, kT_ref, v_ref, aq_ref, bkT_ref, o_ref, *,
                     inv_sqrt_n, env_bf16):
    kv = pl.program_id(2)

    @pl.when(kv == 0)
    def _():
        o_ref[...] = jnp.zeros_like(o_ref)

    # Content scores Q @ K^T on the MXU: bf16 inputs, f32 accumulation.
    # K is pre-transposed in HBM, so this is the natural (M,K)x(K,N) feed.
    scores = jax.lax.dot_general(
        q_ref[0], kT_ref[0],
        dimension_numbers=(((1,), (0,)), ((), ())),
        preferred_element_type=jnp.float32)                       # (TQ, TKV) f32

    # Proximity envelope: pairwise squared distances via one augmented matmul
    # (f32 path; positions are never cast to bf16).
    d2 = jax.lax.dot_general(
        aq_ref[0], bkT_ref[0],
        dimension_numbers=(((1,), (0,)), ((), ())),
        preferred_element_type=jnp.float32)                       # (TQ, TKV)
    neg_d2 = -jnp.maximum(d2, 0.0)

    # TODO(synk): proxattn CUDA kernel source not provided; assumed
    #             O_i = sum_j exp(-|pq_i - pk_j|^2 / r0^2) * (Q_i . K_j) * V_j
    if env_bf16:
        # v6e/v7x: bf16-native VPU/EUP — halve the per-element exp/mul cost;
        # attn is cast to bf16 for the MXU anyway.
        attn = scores.astype(jnp.bfloat16) * jnp.exp(neg_d2.astype(jnp.bfloat16))
    else:
        # v5e (no bf16 VPU/EUP): keep the envelope in f32, cast once at the end.
        attn = (scores * jnp.exp(neg_d2)).astype(v_ref.dtype)

    # Padded KV columns need no mask: K pad rows are zero (scores == 0 there)
    # and V pad rows are zero (their contribution to attn @ V is exactly 0).
    o_ref[0] += jnp.dot(attn.astype(v_ref.dtype), v_ref[0],
                        preferred_element_type=jnp.float32)       # (TQ, D) f32

    @pl.when(kv == pl.num_programs(2) - 1)
    def _():
        # fold the module's `O /= nodes**0.5` into the kernel
        o_ref[...] = o_ref[...] * inv_sqrt_n


def proxattn(Q, K, V, pos_q, pos_k, *, tq_target=256, tkv_target=2048,
             env_bf16=None):
    """Q, K, V: (BH, N, D) bf16 content features; pos_q, pos_k: (BH, N, 3) f32
    positions already scaled by 1/r0 per head.  Returns (BH, N, D) f32."""
    BH, N, D = Q.shape
    A = 5  # augmented-position width (no zero filler)

    if env_bf16 is None:
        try:
            kind = jax.devices()[0].device_kind.lower()
        except Exception:  # pragma: no cover - defensive only
            kind = ""
        env_bf16 = any(t in kind for t in ("v6", "v7", "7x"))

    # Augmented positions so that Aq @ Bk^T == |pq - pk|^2 (f32 path).
    sq_q = jnp.sum(pos_q * pos_q, axis=-1, keepdims=True)
    sq_k = jnp.sum(pos_k * pos_k, axis=-1, keepdims=True)
    Aq = jnp.concatenate([-2.0 * pos_q, sq_q, jnp.ones_like(sq_q)], axis=-1)  # (BH, N, 5)
    Bk = jnp.concatenate([pos_k, jnp.ones_like(sq_k), sq_k], axis=-1)          # (BH, N, 5)

    # One-time HBM layout changes so the kernel never transposes per tile:
    KT = jnp.swapaxes(K, 1, 2)     # (BH, D, N)  — lane-dense K tiles
    BkT = jnp.swapaxes(Bk, 1, 2)   # (BH, 5, N)  — lane-dense Bk tiles

    # Tile sizing: big KV tiles amortize per-step overhead; tiles clamp to the
    # (sublane-rounded) true N, in which case the block spans the full axis.
    TQ = min(_round_up(tq_target, 16), _round_up(N, 16))
    TKV = min(_round_up(tkv_target, 128), _round_up(N, 16))
    # v7x has 2 TensorCores: keep the parallel grid extent >= 2 when possible.
    if BH == 1 and _cdiv(N, TQ) < 2 and N >= 32:
        TQ = min(TQ, _round_up(_cdiv(N, 2), 16))
    Nq = _round_up(N, TQ)
    Nkv = _round_up(N, TKV)

    def pad_axis(x, axis, new):
        if new == x.shape[axis]:
            return x
        pad = [(0, 0)] * x.ndim
        pad[axis] = (0, new - x.shape[axis])
        return jnp.pad(x, pad)

    Qp = pad_axis(Q, 1, Nq)
    Aqp = pad_axis(Aq, 1, Nq)
    KTp = pad_axis(KT, 2, Nkv)
    Vp = pad_axis(V, 1, Nkv)
    BkTp = pad_axis(BkT, 2, Nkv)

    kernel = functools.partial(
        _proxattn_kernel,
        inv_sqrt_n=float(N) ** -0.5,
        env_bf16=bool(env_bf16))

    # VMEM budget from the actual footprint (2x-buffered blocks + (TQ,TKV)
    # f32 temporaries + headroom), capped for v7x's 64 MiB per TensorCore.
    def tile_bytes(rows, cols, dt):
        sub = 16 if dt == jnp.bfloat16 else 8
        return _round_up(rows, sub) * _round_up(cols, 128) * jnp.dtype(dt).itemsize

    blocks = 2 * (tile_bytes(TQ, D, jnp.bfloat16)       # Q
                  + tile_bytes(D, TKV, jnp.bfloat16)    # K^T
                  + tile_bytes(TKV, D, jnp.bfloat16)    # V
                  + tile_bytes(TQ, A, jnp.float32)      # Aq
                  + tile_bytes(A, TKV, jnp.float32)     # Bk^T
                  + tile_bytes(TQ, D, jnp.float32))     # O (resident accumulator)
    temps = 4 * TQ * TKV * 4                            # scores / d2 / exp / attn
    vmem_limit = int(min(max(32 << 20, blocks + temps + (8 << 20)), 56 << 20))

    out = pl.pallas_call(
        kernel,
        out_shape=jax.ShapeDtypeStruct((BH, Nq, D), jnp.float32),
        grid=(BH, Nq // TQ, Nkv // TKV),
        in_specs=[
            pl.BlockSpec((1, TQ, D), lambda b, i, j: (b, i, 0)),     # Q
            pl.BlockSpec((1, D, TKV), lambda b, i, j: (b, 0, j)),    # K^T
            pl.BlockSpec((1, TKV, D), lambda b, i, j: (b, j, 0)),    # V
            pl.BlockSpec((1, TQ, A), lambda b, i, j: (b, i, 0)),     # aug pos_q
            pl.BlockSpec((1, A, TKV), lambda b, i, j: (b, 0, j)),    # aug pos_k^T
        ],
        out_specs=pl.BlockSpec((1, TQ, D), lambda b, i, j: (b, i, 0)),
        compiler_params=pltpu.CompilerParams(
            dimension_semantics=("parallel", "parallel", "arbitrary"),
            vmem_limit_bytes=vmem_limit),
    )(Qp, KTp, Vp, Aqp, BkTp)

    return out[:, :N, :]


# ------------------------------ JAX glue ----------------------------------- #

def _vec_root_s(x):
    # TODO(synk): VecRootS source not provided; assumed x * (1 + |x|^2)^(-1/4)
    #             with the norm over the full feature (last) dim.
    s = jnp.sum(x * x, axis=-1, keepdims=True)
    return x * jax.lax.rsqrt(jnp.sqrt(1.0 + s))   # cheaper / more accurate than **-0.25


def stack_av(a, v):
    """a: (..., chan), v: (..., chan, 3) -> (..., 4*chan), interleaved per channel."""
    *rest, chan = a.shape
    return jnp.concatenate([a[..., None], v], axis=-1).reshape(*rest, 4 * chan)


def split_av(t):
    """Same as the torch module (first chan scalars, rest -> (chan, 3))."""
    *rest, chan4 = t.shape
    chan = chan4 // 4
    return t[..., :chan], t[..., chan:].reshape(*rest, chan, 3)


def init_params(key, H, adim, vdim, chan):
    # matches _param_init_with_scale: std = fan_in ** -0.5, fan_in = shape[1]
    shapes = dict(
        W_aq=(H, chan, adim), W_vq=(H, chan, vdim),
        W_ak=(H, chan, adim), W_vk=(H, chan, vdim),
        W_av=(H, chan, adim), W_vv=(H, chan, vdim),
        W_ao=(H, adim, chan), W_vo=(H, vdim, chan),
    )
    params = {}
    for name, shape in sorted(shapes.items()):
        key, sub = jax.random.split(key)
        std = float(shape[1]) ** -0.5
        params[name] = std * jax.random.normal(sub, shape, dtype=jnp.float32)
    return params


def proximity_flash_attention(params, r0sq, ax, vx, pos_k, pos_q):
    """Forward pass of ProximityFlashAttention.

    ax: (B, N, adim), vx: (B, N, vdim, 3), pos_k/pos_q: (B, H, N, 3)
    returns ay: (B, N, adim), vy: (B, N, vdim, 3)
    """
    B, N, _ = ax.shape
    H, chan, _ = params["W_aq"].shape

    def project(Wa, Wv):
        a = jnp.einsum("hij,bnj->bhni", Wa, ax)        # (B, H, N, chan)
        v = jnp.einsum("hij,bnjv->bhniv", Wv, vx)      # (B, H, N, chan, 3)
        return stack_av(a, v).reshape(B * H, N, 4 * chan)

    # VecRootS on Q, K in f32 (same order as the torch module), then bf16 for the MXU.
    Q = _vec_root_s(project(params["W_aq"], params["W_vq"])).astype(jnp.bfloat16)
    K = _vec_root_s(project(params["W_ak"], params["W_vk"])).astype(jnp.bfloat16)
    V = project(params["W_av"], params["W_vv"]).astype(jnp.bfloat16)

    # pre-scale positions by 1/r0 per head so the kernel's exp(-d2) == exp(-d^2/r0^2);
    # the distance path stays in f32 end-to-end.
    inv_r0 = jax.lax.rsqrt(r0sq.astype(jnp.float32))[None, :, None, None]   # (1,H,1,1)
    pq = (pos_q * inv_r0).reshape(B * H, N, 3)
    pk = (pos_k * inv_r0).reshape(B * H, N, 3)

    # Hot path (QK^T + proximity envelope + attn @ V + /sqrt(N)) in Pallas.
    O = proxattn(Q, K, V, pq, pk)                      # (B*H, N, 4*chan) f32

    ay_h, vy_h = split_av(O)                           # (B*H,N,chan), (B*H,N,chan,3)
    ay = jnp.einsum("hji,bhni->bnj", params["W_ao"], ay_h.reshape(B, H, N, chan))
    vy = jnp.einsum("hji,bhniv->bnjv", params["W_vo"], vy_h.reshape(B, H, N, chan, 3))
    return ay, vy


# ------------------------------- main --------------------------------------- #

if __name__ == "__main__":
    key = jax.random.PRNGKey(0)
    B, N, adim, vdim, chan = 2, 16, 8, 8, 4
    r0_list = [1.0, 2.0]
    H = len(r0_list)
    r0sq = jnp.asarray(r0_list, dtype=jnp.float32) ** 2

    kp, kax, kvx, kpk, kpq = jax.random.split(key, 5)
    params = init_params(kp, H, adim, vdim, chan)
    ax = jax.random.normal(kax, (B, N, adim), dtype=jnp.float32)
    vx = jax.random.normal(kvx, (B, N, vdim, 3), dtype=jnp.float32)
    pos_k = jax.random.normal(kpk, (B, H, N, 3), dtype=jnp.float32)
    pos_q = jax.random.normal(kpq, (B, H, N, 3), dtype=jnp.float32)

    ay, vy = jax.jit(proximity_flash_attention)(params, r0sq, ax, vx, pos_k, pos_q)
    jax.block_until_ready((ay, vy))
    assert ay.shape == (B, N, adim) and ay.dtype == jnp.float32
    assert vy.shape == (B, N, vdim, 3) and vy.dtype == jnp.float32
    assert bool(jnp.all(jnp.isfinite(ay))) and bool(jnp.all(jnp.isfinite(vy)))
    print("KERNEL_OK")
</pallas_src>

<mosaic_0001>
module attributes {stable_mosaic.version = 11 : i64} {
  func.func @_proxattn_kernel(%arg0: i32, %arg1: i32, %arg2: i32, %arg3: memref<1x16x16xbf16, #tpu.memory_space<vmem>>, %arg4: memref<1x16x16xbf16, #tpu.memory_space<vmem>>, %arg5: memref<1x16x16xbf16, #tpu.memory_space<vmem>>, %arg6: memref<1x16x5xf32, #tpu.memory_space<vmem>>, %arg7: memref<1x5x16xf32, #tpu.memory_space<vmem>>, %arg8: memref<1x16x16xf32, #tpu.memory_space<vmem>>) attributes {dimension_semantics = [#tpu.dimension_semantics<parallel>, #tpu.dimension_semantics<parallel>, #tpu.dimension_semantics<arbitrary>], iteration_bounds = array<i64: 4, 1, 1>, scalar_prefetch = 0 : i64, scratch_operands = 0 : i64, tpu.core_type = #tpu.core_type<tc>, window_params = [{transform_indices = @transform_0, window_bounds = array<i64: 1, 16, 16>}, {transform_indices = @transform_1, window_bounds = array<i64: 1, 16, 16>}, {transform_indices = @transform_2, window_bounds = array<i64: 1, 16, 16>}, {transform_indices = @transform_3, window_bounds = array<i64: 1, 16, 5>}, {transform_indices = @transform_4, window_bounds = array<i64: 1, 5, 16>}, {transform_indices = @transform_5, window_bounds = array<i64: 1, 16, 16>}]} {
    %c0_i32 = arith.constant 0 : i32
    %0 = arith.cmpi eq, %arg2, %c0_i32 : i32
    %1 = arith.extui %0 : i1 to i32
    %c0_i32_0 = arith.constant 0 : i32
    %2 = arith.cmpi ne, %1, %c0_i32_0 : i32
    scf.if %2 {
      %cst_27 = arith.constant 0.000000e+00 : f32
      %32 = vector.broadcast %cst_27 : f32 to vector<1x16x16xf32>
      %c0_28 = arith.constant 0 : index
      %c0_29 = arith.constant 0 : index
      %c0_30 = arith.constant 0 : index
      %33 = vector.load %arg8[%c0_28, %c0_29, %c0_30] : memref<1x16x16xf32, #tpu.memory_space<vmem>>, vector<1x16x16xf32>
      tpu.vector_store %arg8[%c0_28, %c0_29, %c0_30], %32 {strides = array<i32>} : memref<1x16x16xf32, #tpu.memory_space<vmem>>, vector<1x16x16xf32>,
    } else {
    }
    %c0 = arith.constant 0 : index
    %c0_1 = arith.constant 0 : index
    %c0_2 = arith.constant 0 : index
    %3 = vector.load %arg3[%c0, %c0_1, %c0_2] : memref<1x16x16xbf16, #tpu.memory_space<vmem>>, vector<1x16x16xbf16>
    %4 = vector.shape_cast %3 : vector<1x16x16xbf16> to vector<16x16xbf16>
    %c0_3 = arith.constant 0 : index
    %c0_4 = arith.constant 0 : index
    %c0_5 = arith.constant 0 : index
    %5 = vector.load %arg4[%c0_3, %c0_4, %c0_5] : memref<1x16x16xbf16, #tpu.memory_space<vmem>>, vector<1x16x16xbf16>
    %6 = vector.shape_cast %5 : vector<1x16x16xbf16> to vector<16x16xbf16>
    %cst = arith.constant dense<0.000000e+00> : vector<16x16xf32>
    %7 = tpu.matmul %4, %6, %cst {dimension_numbers = #tpu.dot_dimension_numbers<[1], [0], [0], [1], [0, 0, 1, 1], [], []>} : vector<16x16xbf16>, vector<16x16xbf16>, vector<16x16xf32> -> vector<16x16xf32>
    %c0_6 = arith.constant 0 : index
    %c0_7 = arith.constant 0 : index
    %c0_8 = arith.constant 0 : index
    %8 = vector.load %arg6[%c0_6, %c0_7, %c0_8] : memref<1x16x5xf32, #tpu.memory_space<vmem>>, vector<1x16x5xf32>
    %9 = vector.shape_cast %8 : vector<1x16x5xf32> to vector<16x5xf32>
    %c0_9 = arith.constant 0 : index
    %c0_10 = arith.constant 0 : index
    %c0_11 = arith.constant 0 : index
    %10 = vector.load %arg7[%c0_9, %c0_10, %c0_11] : memref<1x5x16xf32, #tpu.memory_space<vmem>>, vector<1x5x16xf32>
    %11 = vector.shape_cast %10 : vector<1x5x16xf32> to vector<5x16xf32>
    %cst_12 = arith.constant dense<0.000000e+00> : vector<16x16xf32>
    %12 = tpu.matmul %9, %11, %cst_12 {dimension_numbers = #tpu.dot_dimension_numbers<[1], [0], [0], [1], [0, 0, 1, 1], [], []>} : vector<16x5xf32>, vector<5x16xf32>, vector<16x16xf32> -> vector<16x16xf32>
    %cst_13 = arith.constant 0.000000e+00 : f32
    %13 = vector.broadcast %cst_13 : f32 to vector<16x16xf32>
    %14 = arith.maximumf %12, %13 : vector<16x16xf32>
    %cst_14 = arith.constant 0.000000e+00 : f32
    %15 = vector.broadcast %cst_14 : f32 to vector<16x16xf32>
    %16 = arith.subf %15, %14 : vector<16x16xf32>
    %17 = math.exp %16 : vector<16x16xf32>
    %18 = arith.mulf %7, %17 : vector<16x16xf32>
    %19 = arith.truncf %18 : vector<16x16xf32> to vector<16x16xbf16>
    %c0_15 = arith.constant 0 : index
    %c0_16 = arith.constant 0 : index
    %c0_17 = arith.constant 0 : index
    %20 = vector.load %arg8[%c0_15, %c0_16, %c0_17] : memref<1x16x16xf32, #tpu.memory_space<vmem>>, vector<1x16x16xf32>
    %21 = vector.shape_cast %20 : vector<1x16x16xf32> to vector<16x16xf32>
    %c0_18 = arith.constant 0 : index
    %c0_19 = arith.constant 0 : index
    %c0_20 = arith.constant 0 : index
    %22 = vector.load %arg5[%c0_18, %c0_19, %c0_20] : memref<1x16x16xbf16, #tpu.memory_space<vmem>>, vector<1x16x16xbf16>
    %23 = vector.shape_cast %22 : vector<1x16x16xbf16> to vector<16x16xbf16>
    %cst_21 = arith.constant dense<0.000000e+00> : vector<16x16xf32>
    %24 = tpu.matmul %19, %23, %cst_21 {dimension_numbers = #tpu.dot_dimension_numbers<[1], [0], [0], [1], [0, 0, 1, 1], [], []>} : vector<16x16xbf16>, vector<16x16xbf16>, vector<16x16xf32> -> vector<16x16xf32>
    %25 = arith.addf %21, %24 : vector<16x16xf32>
    %c0_22 = arith.constant 0 : index
    %c0_23 = arith.constant 0 : index
    %c0_24 = arith.constant 0 : index
    %26 = vector.load %arg8[%c0_22, %c0_23, %c0_24] : memref<1x16x16xf32, #tpu.memory_space<vmem>>, vector<1x16x16xf32>
    %27 = vector.shape_cast %26 : vector<1x16x16xf32> to vector<16x16xf32>
    %28 = vector.shape_cast %25 : vector<16x16xf32> to vector<1x16x16xf32>
    tpu.vector_store %arg8[%c0_22, %c0_23, %c0_24], %28 {strides = array<i32>} : memref<1x16x16xf32, #tpu.memory_space<vmem>>, vector<1x16x16xf32>,
    %c0_i32_25 = arith.constant 0 : i32
    %29 = arith.cmpi eq, %arg2, %c0_i32_25 : i32
    %30 = arith.extui %29 : i1 to i32
    %c0_i32_26 = arith.constant 0 : i32
    %31 = arith.cmpi ne, %30, %c0_i32_26 : i32
    scf.if %31 {
      %c0_27 = arith.constant 0 : index
      %c0_28 = arith.constant 0 : index
      %c0_29 = arith.constant 0 : index
      %32 = vector.load %arg8[%c0_27, %c0_28, %c0_29] : memref<1x16x16xf32, #tpu.memory_space<vmem>>, vector<1x16x16xf32>
      %cst_30 = arith.constant 2.500000e-01 : f32
      %33 = vector.broadcast %cst_30 : f32 to vector<1x16x16xf32>
      %34 = arith.mulf %32, %33 : vector<1x16x16xf32>
      %c0_31 = arith.constant 0 : index
      %c0_32 = arith.constant 0 : index
      %c0_33 = arith.constant 0 : index
      %35 = vector.load %arg8[%c0_31, %c0_32, %c0_33] : memref<1x16x16xf32, #tpu.memory_space<vmem>>, vector<1x16x16xf32>
      tpu.vector_store %arg8[%c0_31, %c0_32, %c0_33], %34 {strides = array<i32>} : memref<1x16x16xf32, #tpu.memory_space<vmem>>, vector<1x16x16xf32>,
    } else {
    }
    return
  }
  func.func @transform_0(%arg0: i32, %arg1: i32, %arg2: i32) -> (i32, i32, i32) {
    %c0_i32 = arith.constant 0 : i32
    %c0_i32_0 = arith.constant 0 : i32
    return %arg0, %arg1, %c0_i32 : i32, i32, i32
  }
  func.func @transform_1(%arg0: i32, %arg1: i32, %arg2: i32) -> (i32, i32, i32) {
    %c0_i32 = arith.constant 0 : i32
    %c0_i32_0 = arith.constant 0 : i32
    return %arg0, %c0_i32, %arg2 : i32, i32, i32
  }
  func.func @transform_2(%arg0: i32, %arg1: i32, %arg2: i32) -> (i32, i32, i32) {
    %c0_i32 = arith.constant 0 : i32
    %c0_i32_0 = arith.constant 0 : i32
    return %arg0, %arg2, %c0_i32 : i32, i32, i32
  }
  func.func @transform_3(%arg0: i32, %arg1: i32, %arg2: i32) -> (i32, i32, i32) {
    %c0_i32 = arith.constant 0 : i32
    %c0_i32_0 = arith.constant 0 : i32
    return %arg0, %arg1, %c0_i32 : i32, i32, i32
  }
  func.func @transform_4(%arg0: i32, %arg1: i32, %arg2: i32) -> (i32, i32, i32) {
    %c0_i32 = arith.constant 0 : i32
    %c0_i32_0 = arith.constant 0 : i32
    return %arg0, %c0_i32, %arg2 : i32, i32, i32
  }
  func.func @transform_5(%arg0: i32, %arg1: i32, %arg2: i32) -> (i32, i32, i32) {
    %c0_i32 = arith.constant 0 : i32
    %c0_i32_0 = arith.constant 0 : i32
    return %arg0, %arg1, %c0_i32 : i32, i32, i32
  }
}

</mosaic_0001>

<bundles_post_ra>
// kernel: proximity_flash_attention.1
= control target key start
LH: loop header
LB: loop body
LE: loop exit
PB: predicated region body
PF: predicated region fallthrough
CT: control target
= control target key end

     0   :  { %s940_s18 = smov 0   ;;  %s942_s19 = smov 0   ;;  %s1011_s0 = inlined_call_operand.vmem [shape: bf16[4,16,16], index: 0, kind: input, shape index: {}]   ;;  %s1012_s1 = inlined_call_operand.vmem [shape: bf16[4,16,16], index: 1, kind: input, shape index: {}]   ;;  %s1013_s2 = inlined_call_operand.vmem [shape: bf16[4,16,16], index: 2, kind: input, shape index: {}]   ;;  %s1014_s3 = inlined_call_operand.vmem [shape: f32[4,16,5], index: 3, kind: input, shape index: {}]   ;;  %s1015_s4 = inlined_call_operand.vmem [shape: f32[4,5,16], index: 4, kind: input, shape index: {}]   ;;  %s1016_s5 = inlined_call_operand.vmem [shape: f32[4,16,16], index: 5, kind: output, shape index: {}]  }
   0x1   :  { %s944_s20 = smov 0  }
   0x2 LB: > { %s34_s21 = sadd.s32 1, %s902_s19  ;;  %p800_p0 = scmp.ge.s32.totalorder %s906_s20, 1  ;;  %s906_s20 = sphi %s944_s20, %s15_s20   ;;  %s902_s19 = sphi %s942_s19, %s1018_s19   ;;  %s898_s18 = sphi %s940_s18, %s1017_s18  }
   0x3   : > { %p36_p1 = scmp.ge.s32.totalorder %s34_s21, 4  ;;  %p278_p2 = scmp.lt.s32.totalorder %s906_s20, 5 }
   0x5   : > { %s1020_s21 = smov (%p36_p1, %s34_s21), 0  ;;  %p279_p3 = pnand %p800_p0, %p278_p2 }
   0x6   : > { %p348_p4 = scmp.lt.s32.totalorder (!%p279_p3), %s898_s18, 3  ;;  %v908_v0 = vmov (!%p279_p3), 0.0   ;;  %vm909_vm0 = vmmov (!%p279_p3), 0   ;;  %vm480_vm1 = vcmask (!%p279_p3), 1044480   ;;  %vm473_vm2 = vcmask (!%p279_p3), 39936  }
   0x7   : > { %282 = sbr.rel (%p279_p3) target bundleno = 481 (0x1e1), region = 40  ;;  %834 = vmatprep.subr.bf16.mxu0 (!%p279_p3), %v908_v0  ;;  %836 = vmatprep.mubr.msk.bf16.mxu0 (!%p279_p3), %vm909_vm0, %v908_v0  ;;  %vm407_vm3 = vcmask (!%p279_p3), 130048  }
   0xe   : > { %s1022_s18 = smov (!%p348_p4, %s898_s18), 3 }
   0xf   : > { %s822_s22 = sshll.u32 %s1022_s18, 3  ;;  %s825_s23 = sshll.u32 %s1022_s18, 4 }
  0x10   : > { %s355_s26 = scalar_lea.vmem %s1011_s0, %s822_s22  ;;  %s391_s29 = scalar_lea.vmem %s1015_s4, %s822_s22 }
  0x11   : > { %s383_s7 = scalar_lea.vmem %s1014_s3, %s825_s23  ;;  %v472_v1 = vld [vmem:[%s391_s29] sm:$0x1f]  ;;  %s971_s10 = scalar_lea.vmem %s1016_s5, %s825_s23 }
  0x12   : > { %v470_v2 = vld [vmem:[%s383_s7] sm:$0xff]  ;;  %v471_v3 = vld [vmem:[%s383_s7 + $0x8] sm:$0xff]  ;;  %s364_s13 = scalar_lea.vmem %s1012_s1, %s822_s22  ;;  %s373_s16 = scalar_lea.vmem %s1013_s2, %s822_s22  ;;  %840 = vmatprep.subr.msk.mxu1 %vm480_vm1, %v472_v1  ;;  %408 = vst.msk [vmem:[%s971_s10] sm:$0xff] %vm407_vm3, %v908_v0  ;;  %409 = vst.msk [vmem:[%s971_s10 + $0x8] sm:$0xff] %vm407_vm3, %v908_v0 }
  0x13   : > { %842 = vmatprep.mubr.msk.f32.mxu1 %vm473_vm2, %v470_v2  ;;  %v877_v4 = vld [vmem:[%s364_s13] sm:$0xff]   ;;  %841 = vmatpush3.msk.msra.mxu1 %vm480_vm1, %v472_v1 }
  0x14   : > { %v878_v5 = vld [vmem:[%s355_s26] sm:$0xff]   ;;  %843 = vmatmul.mubr.msk.f32.vlgmr.msra.gmra.mrb[0].mxu1 %vm473_vm2, %v471_v3  ;;  %835 = vmatpush3.bf16.msra.mxu0 %v877_v4 }
  0x15   : > { %845 = vmatprep.subr.bf16.mxu1 %v908_v0  ;;  %847 = vmatprep.mubr.msk.bf16.mxu1 %vm909_vm0, %v908_v0  ;;  %v879_v6 = vld [vmem:[%s373_s16] sm:$0xff]  }
  0x16   : > { %846 = vmatpush3.bf16.msra.mxu1 %v879_v6 }
  0x17   : > { %837 = vmatmul.mubr.msk.bf16.vlgmr.msra.gmra.mrb[0].mxu0 %vm407_vm3, %v878_v5 }
  0x19   : > { %v570_v24 = vld [vmem:[%s971_s10] sm:$0xff]  ;;  %v571_v26 = vld [vmem:[%s971_s10 + $0x8] sm:$0xff] }
  0xe7   : > { %v844_v7 = vpop.f32.mrb[0].mxu1 }
  0xe8   : > { %v560_v8 = vmax.f32 %v844_v7, 0.0  ;;  %v550_v9 = vpop.f32.mrb[1].mxu1 }
  0xe9   : > { %v559_v10 = vmax.f32 %v550_v9, 0.0 }
  0xea   : > { %v562_v11 = vsub.f32 0.0, %v560_v8  ;;  %v463_v12 = vpop.f32.mrb[0].mxu0 }
  0xeb   : > { %v561_v13 = vsub.f32 0.0, %v559_v10  ;;  %v838_v14 = vpop.f32.mrb[1].mxu0 }
  0xec   : > { %v565_v15 = vmul.f32 1.442695, %v562_v11  ;;  %v466_v16 = vpop.f32.mrb[2].mxu0 }
  0xed   : > { %v563_v17 = vmul.f32 1.442695, %v561_v13  ;;  %v839_v18 = vpop.f32.mrb[3].mxu0 }
  0xee   : > { %880 = vpow2.f32 %v565_v15 }
  0xef   : > { %882 = vpow2.f32 %v563_v17 }
  0xf8   : > { %v881_v19 = vpop.eup %880 }
  0xf9   : > { %v883_v20 = vpop.eup %882  ;;  %v568_v21 = vmul.f32 %v881_v19, %v466_v16 }
  0xfa   : > { %v567_v22 = vmul.f32 %v883_v20, %v463_v12 }
  0xfc   : > { %v569_v23 = vpack.c.bf16 %v568_v21, %v567_v22 }
  0xfe   : > { %848 = vmatmul.mubr.msk.bf16.vlgmr.msra.gmra.mrb[4].mxu1 %vm407_vm3, %v569_v23 }
 0x1d1   : > { %v617_v25 = vpop.f32.mrb[4].mxu1 }
 0x1d2   : > { %v624_v27 = vadd.f32 %v617_v25, %v570_v24  ;;  %v849_v28 = vpop.f32.mrb[5].mxu1 }
 0x1d3   : > { %v620_v29 = vpop.f32.mrb[6].mxu1 }
 0x1d4   : > { %626 = vst.msk [vmem:[%s971_s10] sm:$0xff] %vm407_vm3, %v624_v27  ;;  %v625_v30 = vadd.f32 %v620_v29, %v571_v26  ;;  %v850_v31 = vpop.f32.mrb[7].mxu1 }
 0x1d6   : > { %627 = vst.msk [vmem:[%s971_s10 + $0x8] sm:$0xff] %vm407_vm3, %v625_v30 }
 0x1db   : > { %v631_v32 = vld [vmem:[%s971_s10] sm:$0xff] }
 0x1dc   : > { %v633_v33 = vmul.f32 0.25, %v631_v32 }
 0x1dd   : > { %v632_v34 = vld [vmem:[%s971_s10 + $0x8] sm:$0xff] }
 0x1de   : > { %635 = vst.msk [vmem:[%s971_s10] sm:$0xff] %vm407_vm3, %v633_v33  ;;  %v634_v35 = vmul.f32 0.25, %v632_v34 }
 0x1e0   : > { %636 = vst.msk [vmem:[%s971_s10 + $0x8] sm:$0xff] %vm407_vm3, %v634_v35 }
 0x1e1 PF: > { %s15_s20 = sadd.s32 1, %s906_s20   ;;  %s1017_s18 = smov %s902_s19 }
 0x1e2   : > { %p12_p5 = scmp.ge.s32.totalorder %s15_s20, 6   ;;  %s1018_s19 = smov %s1020_s21 }
 0x1e4   :  { %14 = sbr.rel (!%p12_p5) target bundleno = 2 (0x2), region = 90 }

</bundles_post_ra>
